<compile_context>
chip_gen: v7x
topology: tpu7x:2x2x1
jax: 0.10.0
libtpu: 0.0.40
codegen_flags: <defaults>
</compile_context>

<pallas_src>
import math
from functools import partial

import jax
import jax.numpy as jnp
import numpy as np
from jax.experimental import pallas as pl
from jax.experimental.pallas import tpu as pltpu


# ---------------------------------------------------------------------------
# Trace-time construction of the composed Laplacian operators.
#   conv_gauss(img) = T_h @ img @ T_w^T        (replicate pad + 5x5 Gaussian)
#   mask step       = diag(u) @ F @ diag(v)    (u,v = 2 at even idx, 0 at odd)
#   => lap(img)     = img - A_h @ img @ A_w
#      A_h = T_h @ diag(u) @ T_h,   A_w = T_w^T @ diag(v) @ T_w^T
# ---------------------------------------------------------------------------
_K1D = np.array([0.05, 0.25, 0.4, 0.25, 0.05], dtype=np.float64)


def _replicate_conv_matrix(size):
    t = np.zeros((size, size), dtype=np.float64)
    for i in range(size):
        for a in range(5):
            src = min(max(i + a - 2, 0), size - 1)
            t[i, src] += _K1D[a]
    return t


def _edge_operators(h, w):
    th = _replicate_conv_matrix(h)
    tw = _replicate_conv_matrix(w)
    u = np.zeros(h, dtype=np.float64)
    u[::2] = 2.0
    v = np.zeros(w, dtype=np.float64)
    v[::2] = 2.0
    a_h = th @ np.diag(u) @ th            # applied from the left  (H x H)
    a_w = tw.T @ np.diag(v) @ tw.T        # applied from the right (W x W)
    return jnp.asarray(a_h, jnp.float32), jnp.asarray(a_w, jnp.float32)


# ---------------------------------------------------------------------------
# Pallas kernel.
# x_ref / y_ref : (bc*H, W) slab of flattened images (H stays on sublanes,
#                 W on lanes; no in-kernel reshapes).
# r_ref         : VMEM scratch holding (x - y) @ A_w for the whole slab.
# out_ref       : lane-dense (1, 8, 128) tile holding this step's partial sum.
# ---------------------------------------------------------------------------
def edge_loss_kernel(x_ref, y_ref, ah_ref, aw_ref, out_ref, r_ref, *,
                     bc, h, b_total, eps2):
    w = x_ref.shape[1]
    base = pl.program_id(0) * bc
    nb = jnp.minimum(bc, b_total - base)          # valid images in this block

    ah = ah_ref[...]                              # (H, H) compute dtype
    aw = aw_ref[...]                              # (W, W) compute dtype
    cdtype = ah.dtype

    # lap(x) - lap(y) == d - A_h @ d @ A_w, d = x - y (operator is linear).
    # Right multiply fused over the whole slab: one (bc*H, W) @ (W, W) matmul.
    # Each output row depends only on its own input row, so garbage rows in the
    # tail block never contaminate valid images.
    d_all = (x_ref[...] - y_ref[...]).astype(cdtype)
    r_ref[...] = jnp.dot(d_all, aw,
                         preferred_element_type=jnp.float32).astype(r_ref.dtype)

    def body(b, acc):
        row0 = b * h
        if h % 8 == 0:
            row0 = pl.multiple_of(row0, h)
        # Left multiply for this image: (H, H) @ (H, W) on the MXU.
        gb = jnp.dot(ah, r_ref[pl.ds(row0, h), :],
                     preferred_element_type=jnp.float32)
        db = (x_ref[pl.ds(row0, h), :].astype(jnp.float32)
              - y_ref[pl.ds(row0, h), :].astype(jnp.float32))
        lap = db - gb
        return acc + jnp.sqrt(lap * lap + eps2)   # elementwise accumulate

    acc = jax.lax.fori_loop(0, nb, body, jnp.zeros((h, w), jnp.float32))
    # Single cross-lane reduce per grid step; lane-dense unmasked store.
    out_ref[...] = jnp.broadcast_to(jnp.sum(acc), out_ref.shape)


# ---------------------------------------------------------------------------
# Block-size heuristic / VMEM accounting.
# ---------------------------------------------------------------------------
def _pad8(n):
    return -(-n // 8) * 8


def _pad128(n):
    return -(-n // 128) * 128


def _vmem_estimate(bc, h, w, in_itemsize, csize):
    wp = _pad128(w)
    rows = _pad8(bc * h)
    return (4 * rows * wp * in_itemsize                               # x,y double-buffered
            + rows * wp * csize                                       # r scratch
            + 2 * (_pad8(h) * _pad128(h) + _pad8(w) * wp) * csize     # A_h, A_w (x2 bufs)
            + 6 * _pad8(h) * wp * 4)                                  # loop temporaries


def _choose_block_batch(b_total, h, w, in_itemsize, csize, budget=24 << 20):
    wp = _pad128(w)
    fixed = (2 * (_pad8(h) * _pad128(h) + _pad8(w) * wp) * csize
             + 6 * _pad8(h) * wp * 4)
    per_img = h * wp * (4 * in_itemsize + csize)
    bc = max(1, (budget - fixed) // per_img)
    bc = min(bc, b_total)
    if b_total >= 2:                       # keep >= 2 grid steps (v7x has 2 TCs)
        bc = min(bc, -(-b_total // 2))
    if bc < b_total:                       # flattened block rows must be 8-aligned
        sub = 8 // math.gcd(8, h)
        bc = (bc // sub) * sub
        if bc == 0:
            bc = min(sub, b_total)
        if bc < b_total and (bc * h) % 8 != 0:
            bc = b_total                   # fall back to one full block
    return int(bc)


# ---------------------------------------------------------------------------
# Wrapper (== EdgeLoss.forward)
# ---------------------------------------------------------------------------
def edge_loss(x, y, *, eps=1e-3, block_batch=None, force_bf16_matmul=False):
    n, c, h, w = x.shape
    assert y.shape == x.shape
    b_total = n * c

    # bf16 callers get native bf16xbf16 -> f32-accumulate MXU matmuls; f32
    # callers keep f32 operands unless they opt in (precision tradeoff).
    cdtype = jnp.bfloat16 if (x.dtype == jnp.bfloat16 or force_bf16_matmul) \
        else jnp.float32
    in_itemsize = int(np.dtype(x.dtype).itemsize)
    csize = int(np.dtype(cdtype).itemsize)

    if block_batch is None:
        bc = _choose_block_batch(b_total, h, w, in_itemsize, csize)
    else:
        bc = int(min(block_batch, b_total))
        if bc < b_total and (bc * h) % 8 != 0:
            sub = 8 // math.gcd(8, h)
            bc = max(sub, (bc // sub) * sub)
            if bc > b_total or (bc * h) % 8 != 0:
                bc = b_total
    bc = int(min(bc, b_total))

    g = pl.cdiv(b_total, bc)

    # No jnp.pad: the tail block relies on Pallas' implicit block padding plus
    # the in-kernel valid-image trip count.
    xf = x.reshape(b_total * h, w)
    yf = y.reshape(b_total * h, w)

    a_h, a_w = _edge_operators(h, w)
    a_h = a_h.astype(cdtype)
    a_w = a_w.astype(cdtype)

    eps2 = float(np.float32(eps) * np.float32(eps))

    est = _vmem_estimate(bc, h, w, in_itemsize, csize)
    vmem_limit = int(min(48 << 20, max(32 << 20, 2 * est)))

    partials = pl.pallas_call(
        partial(edge_loss_kernel, bc=bc, h=h, b_total=b_total, eps2=eps2),
        out_shape=jax.ShapeDtypeStruct((g, 8, 128), jnp.float32),
        grid=(g,),
        in_specs=[
            pl.BlockSpec((bc * h, w), lambda i: (i, 0)),
            pl.BlockSpec((bc * h, w), lambda i: (i, 0)),
            pl.BlockSpec((h, h), lambda i: (0, 0)),
            pl.BlockSpec((w, w), lambda i: (0, 0)),
        ],
        out_specs=pl.BlockSpec((1, 8, 128), lambda i: (i, 0, 0)),
        scratch_shapes=[pltpu.VMEM((bc * h, w), cdtype)],
        compiler_params=pltpu.CompilerParams(
            dimension_semantics=("parallel",),
            vmem_limit_bytes=vmem_limit),
    )(xf, yf, a_h, a_w)

    total = jnp.sum(partials[:, 0, 0])
    return total / (n * c * h * w)        # Charbonnier mean


# ---------------------------------------------------------------------------
# Pure-JAX reference (mirrors the PyTorch module op-for-op)
# ---------------------------------------------------------------------------
def edge_loss_ref(x, y, *, eps=1e-3):
    n, c, h, w = x.shape
    k1 = jnp.asarray(_K1D, jnp.float32)
    k2 = jnp.outer(k1, k1)
    kern = jnp.tile(k2[None, None], (c, 1, 1, 1))

    def conv_gauss(img):
        img = jnp.pad(img, ((0, 0), (0, 0), (2, 2), (2, 2)), mode="edge")
        return jax.lax.conv_general_dilated(
            img.astype(jnp.float32), kern, (1, 1), "VALID",
            dimension_numbers=("NCHW", "OIHW", "NCHW"),
            feature_group_count=c, precision=jax.lax.Precision.HIGHEST)

    def lap(cur):
        filt = conv_gauss(cur)
        new = jnp.zeros_like(filt)
        new = new.at[:, :, ::2, ::2].set(filt[:, :, ::2, ::2] * 4.0)
        return cur - conv_gauss(new)

    d = lap(x) - lap(y)
    return jnp.mean(jnp.sqrt(d * d + jnp.float32(eps) * jnp.float32(eps)))


if __name__ == "__main__":
    key = jax.random.PRNGKey(0)
    k1, k2 = jax.random.split(key)
    # EdgeLoss hardcodes 3 channels (kernel.repeat(3, 1, 1, 1), groups=3).
    x = jax.random.uniform(k1, (2, 3, 16, 16), dtype=jnp.float32)
    y = jax.random.uniform(k2, (2, 3, 16, 16), dtype=jnp.float32)

    loss = jax.block_until_ready(edge_loss(x, y))
    loss_ref = jax.block_until_ready(edge_loss_ref(x, y))

    np.testing.assert_allclose(np.asarray(loss), np.asarray(loss_ref),
                               rtol=1e-4, atol=1e-5)
    print("KERNEL_OK")
</pallas_src>

<mosaic_0001>
module attributes {stable_mosaic.version = 11 : i64} {
  func.func @edge_loss_kernel(%arg0: i32, %arg1: memref<48x16xf32, #tpu.memory_space<vmem>>, %arg2: memref<48x16xf32, #tpu.memory_space<vmem>>, %arg3: memref<16x16xf32, #tpu.memory_space<vmem>>, %arg4: memref<16x16xf32, #tpu.memory_space<vmem>>, %arg5: memref<1x8x128xf32, #tpu.memory_space<vmem>>, %arg6: memref<48x16xf32, #tpu.memory_space<vmem>>) attributes {dimension_semantics = [#tpu.dimension_semantics<parallel>], iteration_bounds = array<i64: 2>, scalar_prefetch = 0 : i64, scratch_operands = 1 : i64, tpu.core_type = #tpu.core_type<tc>, window_params = [{transform_indices = @transform_0, window_bounds = array<i64: 48, 16>}, {transform_indices = @transform_1, window_bounds = array<i64: 48, 16>}, {pipeline_mode = #tpu.pipeline_mode<synchronous>, transform_indices = @transform_2, window_bounds = array<i64: 16, 16>}, {pipeline_mode = #tpu.pipeline_mode<synchronous>, transform_indices = @transform_3, window_bounds = array<i64: 16, 16>}, {transform_indices = @transform_4, window_bounds = array<i64: 1, 8, 128>}]} {
    %c3_i32 = arith.constant 3 : i32
    %0 = arith.muli %arg0, %c3_i32 : i32
    %c6_i32 = arith.constant 6 : i32
    %1 = arith.subi %c6_i32, %0 : i32
    %c3_i32_0 = arith.constant 3 : i32
    %2 = arith.minsi %c3_i32_0, %1 : i32
    %c0 = arith.constant 0 : index
    %c0_1 = arith.constant 0 : index
    %3 = vector.load %arg3[%c0, %c0_1] : memref<16x16xf32, #tpu.memory_space<vmem>>, vector<16x16xf32>
    %c0_2 = arith.constant 0 : index
    %c0_3 = arith.constant 0 : index
    %4 = vector.load %arg4[%c0_2, %c0_3] : memref<16x16xf32, #tpu.memory_space<vmem>>, vector<16x16xf32>
    %c0_4 = arith.constant 0 : index
    %c0_5 = arith.constant 0 : index
    %5 = vector.load %arg1[%c0_4, %c0_5] : memref<48x16xf32, #tpu.memory_space<vmem>>, vector<48x16xf32>
    %c0_6 = arith.constant 0 : index
    %c0_7 = arith.constant 0 : index
    %6 = vector.load %arg2[%c0_6, %c0_7] : memref<48x16xf32, #tpu.memory_space<vmem>>, vector<48x16xf32>
    %7 = arith.subf %5, %6 : vector<48x16xf32>
    %cst = arith.constant dense<0.000000e+00> : vector<48x16xf32>
    %8 = tpu.matmul %7, %4, %cst {dimension_numbers = #tpu.dot_dimension_numbers<[1], [0], [0], [1], [0, 0, 1, 1], [], []>} : vector<48x16xf32>, vector<16x16xf32>, vector<48x16xf32> -> vector<48x16xf32>
    %c0_8 = arith.constant 0 : index
    %c0_9 = arith.constant 0 : index
    %9 = vector.load %arg6[%c0_8, %c0_9] : memref<48x16xf32, #tpu.memory_space<vmem>>, vector<48x16xf32>
    tpu.vector_store %arg6[%c0_8, %c0_9], %8 {strides = array<i32>} : memref<48x16xf32, #tpu.memory_space<vmem>>, vector<48x16xf32>,
    %cst_10 = arith.constant 0.000000e+00 : f32
    %10 = vector.broadcast %cst_10 : f32 to vector<16x16xf32>
    %c0_i32 = arith.constant 0 : i32
    %11 = arith.subi %2, %c0_i32 : i32
    %12 = arith.addi %c0_i32, %11 : i32
    %c1_i32 = arith.constant 1 : i32
    %13 = scf.for %arg7 = %c0_i32 to %12 step %c1_i32 iter_args(%arg8 = %10) -> (vector<16x16xf32>)  : i32 {
      %c16_i32 = arith.constant 16 : i32
      %20 = arith.muli %arg7, %c16_i32 : i32
      %21 = tpu.assume_multiple %20, 16 : i32
      %22 = arith.index_cast %21 : i32 to index
      %c0_15 = arith.constant 0 : index
      %23 = vector.load %arg6[%22, %c0_15] : memref<48x16xf32, #tpu.memory_space<vmem>>, vector<16x16xf32>
      %cst_16 = arith.constant dense<0.000000e+00> : vector<16x16xf32>
      %24 = tpu.matmul %3, %23, %cst_16 {dimension_numbers = #tpu.dot_dimension_numbers<[1], [0], [0], [1], [0, 0, 1, 1], [], []>} : vector<16x16xf32>, vector<16x16xf32>, vector<16x16xf32> -> vector<16x16xf32>
      %25 = arith.index_cast %21 : i32 to index
      %c0_17 = arith.constant 0 : index
      %26 = vector.load %arg1[%25, %c0_17] : memref<48x16xf32, #tpu.memory_space<vmem>>, vector<16x16xf32>
      %27 = arith.index_cast %21 : i32 to index
      %c0_18 = arith.constant 0 : index
      %28 = vector.load %arg2[%27, %c0_18] : memref<48x16xf32, #tpu.memory_space<vmem>>, vector<16x16xf32>
      %29 = arith.subf %26, %28 : vector<16x16xf32>
      %30 = arith.subf %29, %24 : vector<16x16xf32>
      %31 = arith.mulf %30, %30 : vector<16x16xf32>
      %cst_19 = arith.constant 1.00000011E-6 : f32
      %32 = vector.broadcast %cst_19 : f32 to vector<16x16xf32>
      %33 = arith.addf %31, %32 : vector<16x16xf32>
      %34 = math.sqrt %33 : vector<16x16xf32>
      %35 = arith.addf %arg8, %34 : vector<16x16xf32>
      scf.yield %35 : vector<16x16xf32>
    }
    %14 = vector.shape_cast %13 : vector<16x16xf32> to vector<1x16x16xf32>
    %cst_11 = arith.constant dense<0.000000e+00> : vector<1xf32>
    %15 = vector.multi_reduction <add>, %14, %cst_11 [1, 2] : vector<1x16x16xf32> to vector<1xf32>
    %16 = vector.shape_cast %15 : vector<1xf32> to vector<1x1x1xf32>
    %17 = vector.extract %16[0, 0, 0] : f32 from vector<1x1x1xf32>
    %18 = vector.broadcast %17 : f32 to vector<1x8x128xf32>
    %c0_12 = arith.constant 0 : index
    %c0_13 = arith.constant 0 : index
    %c0_14 = arith.constant 0 : index
    %19 = vector.load %arg5[%c0_12, %c0_13, %c0_14] : memref<1x8x128xf32, #tpu.memory_space<vmem>>, vector<1x8x128xf32>
    tpu.vector_store %arg5[%c0_12, %c0_13, %c0_14], %18 {strides = array<i32>} : memref<1x8x128xf32, #tpu.memory_space<vmem>>, vector<1x8x128xf32>,
    return
  }
  func.func @transform_0(%arg0: i32) -> (i32, i32) {
    %c0_i32 = arith.constant 0 : i32
    %c0_i32_0 = arith.constant 0 : i32
    return %arg0, %c0_i32 : i32, i32
  }
  func.func @transform_1(%arg0: i32) -> (i32, i32) {
    %c0_i32 = arith.constant 0 : i32
    %c0_i32_0 = arith.constant 0 : i32
    return %arg0, %c0_i32 : i32, i32
  }
  func.func @transform_2(%arg0: i32) -> (i32, i32) {
    %c0_i32 = arith.constant 0 : i32
    %c0_i32_0 = arith.constant 0 : i32
    %c0_i32_1 = arith.constant 0 : i32
    return %c0_i32, %c0_i32_0 : i32, i32
  }
  func.func @transform_3(%arg0: i32) -> (i32, i32) {
    %c0_i32 = arith.constant 0 : i32
    %c0_i32_0 = arith.constant 0 : i32
    %c0_i32_1 = arith.constant 0 : i32
    return %c0_i32, %c0_i32_0 : i32, i32
  }
  func.func @transform_4(%arg0: i32) -> (i32, i32, i32) {
    %c0_i32 = arith.constant 0 : i32
    %c0_i32_0 = arith.constant 0 : i32
    %c0_i32_1 = arith.constant 0 : i32
    return %arg0, %c0_i32, %c0_i32_0 : i32, i32, i32
  }
}

</mosaic_0001>

<bundles_post_ra>
// kernel: tpu_custom_call.1
= control target key start
LH: loop header
LB: loop body
LE: loop exit
PB: predicated region body
PF: predicated region fallthrough
CT: control target
= control target key end

     0   :  { %9 = vsyncpa [#allocation4], 0  ;;  %s1079_s0 = inlined_call_operand.vmem [shape: f32[96,16], index: 0, kind: input, shape index: {}]   ;;  %s1080_s1 = inlined_call_operand.vmem [shape: f32[96,16], index: 1, kind: input, shape index: {}]   ;;  %s1081_s2 = inlined_call_operand.vmem [shape: f32[16,16], index: 2, kind: input, shape index: {}]   ;;  %s1082_s3 = inlined_call_operand.vmem [shape: f32[16,16], index: 3, kind: input, shape index: {}]   ;;  %s1083_s4 = inlined_call_operand.hbm [shape: f32[2,8,128], index: 4, kind: output, shape index: {}]  }
   0x1   :  { %11 = vsyncpa [#allocation4 + $0x1], 0  ;;  %s886_s15 = smov 0   ;;  %s888_s16 = smov 0  }
   0x2   :  { %s890_s17 = smov 0   ;;  %s892_s18 = smov 0  }
   0x3 LB: > { %s907_s19 = sadd.s32 4294967295, %s838_s18   ;;  %s605_s20 = sadd.s32 4294967294, %s838_s18   ;;  %s838_s18 = sphi %s892_s18, %s1091_s18   ;;  %s834_s17 = sphi %s890_s17, %s1090_s17   ;;  %s830_s16 = sphi %s888_s16, %s1089_s16   ;;  %s826_s15 = sphi %s886_s15, %s1088_s15  }
   0x4   : > { %s911_s21 = sadd.s32 1, %s838_s18   ;;  %s118_s22 = sadd.s32 1, %s834_s17 }
   0x5   : > { %s115_s23 = ssub.s32 %s838_s18, %s911_s21  ;;  %p128_p0 = scmp.ne.s32.totalorder %s834_s17, %s830_s16 }
   0x6   : > { %p116_p1 = scmp.eq.s32.totalorder %s115_s23, 0  ;;  %p129_p2 = scmp.eq.s32.totalorder %s907_s19, 1 }
   0x7   : > { %p134_p3 = scmp.ne.s32.totalorder %s830_s16, %s826_s15  ;;  %p135_p4 = scmp.eq.s32.totalorder %s605_s20, 1 }
   0x8   : > { %s922_s24 = scalar_select %p116_p1, %s834_s17, %s118_s22  }
   0x9   : > { %p924_p5 = por %p129_p2, %p128_p0  ;;  %p928_p6 = por %p135_p4, %p134_p3 }
   0xa   : > { %p608_p7 = scmp.ge.s32.totalorder %s838_s18, 1  ;;  %p177_p8 = scmp.lt.s32.totalorder %s838_s18, 3 }
   0xc   : > { %p178_p9 = pnand %p608_p7, %p177_p8 }
   0xd   : > { %v226_v0 = vld [vmem:[%s1082_s3] sm:$0xff] (!%p178_p9)  ;;  %v227_v1 = vld [vmem:[%s1082_s3 + $0x8] sm:$0xff] (!%p178_p9)  ;;  %s205_s5 = sand.u32 (!%p178_p9), 1, %s830_s16   ;;  %s220_s6 = smul.u32 (!%p178_p9), 3, %s907_s19  ;;  %vm246_vm0 = vcmask (!%p178_p9), 130048   ;;  %v999_v29 = vmov (!%p178_p9), 0.0  }
   0xe   : > { %181 = sbr.rel (%p178_p9) target bundleno = 720 (0x2d0), region = 36  ;;  %v945_v2 = vld [vmem:[%s1081_s2] sm:$0xff] (!%p178_p9)  ;;  %v661_v3 = vpack.c.bf16 (!%p178_p9), %v227_v1, %v226_v0  ;;  %s949_s9 = sshll.u32 (!%p178_p9), %s205_s5, 3  ;;  %v954_v4 = vld [vmem:[%s1081_s2 + $0x8] sm:$0xff] (!%p178_p9)  ;;  %v1001_v30 = vmov (!%p178_p9), 0.0  }
   0xf   : > { %s208_s12 = smul.u32 (!%p178_p9), 6, %s907_s19  ;;  %s957_s13 = ssub.s32 (!%p178_p9), 6, %s220_s6 }
  0x10   : > { %669 = vmatprep.subr.bf16.mxu1 (!%p178_p9), %v661_v3  ;;  %p222_p10 = scmp.lt.s32.totalorder (!%p178_p9), %s957_s13, 3  ;;  %662 = vmatprep.subr.bf16.mxu0 (!%p178_p9), %v661_v3  ;;  %s207_s6 = scalar_lea.vmem (!%p178_p9), [#allocation3], %s949_s9 }
  0x11   : > { %p209_p11 = scmp.lt.s32.totalorder (!%p178_p9), %s208_s12, 11  ;;  %670 = vmatpush3.bf16.msra.mxu1 (!%p178_p9), %v661_v3  ;;  %664 = vmatpush3.bf16.msra.mxu0 (!%p178_p9), %v661_v3  ;;  %p626_p12 = scmp.le.s32.totalorder (!%p178_p9), %s957_s13, 0 }
  0x15   : > { %s961_s14 = scalar_select %p222_p10, %s957_s13, 3 }
  0x16   : > { %s1093_s12 = smov (!%p209_p11, %s208_s12), 11  ;;  %v840_v31 = vmov (!%p626_p12), 0.0   ;;  %v844_v32 = vmov (!%p626_p12), 0.0   ;;  %s1003_s7 = smov (!%p626_p12), 0  }
  0x17   : > { %s610_s20 = sshll.u32 %s1093_s12, 3 }
  0x18   : > { %s966_s27 = scalar_lea.vmem %s1079_s0, %s610_s20  ;;  %s971_s30 = scalar_lea.vmem %s1080_s1, %s610_s20 }
  0x19   : > { %v230_v5 = vld [vmem:[%s966_s27 + $0x10] sm:$0xff]  ;;  %v231_v7 = vld [vmem:[%s966_s27 + $0x18] sm:$0xff]  ;;  %v228_v10 = vld [vmem:[%s966_s27] sm:$0xff] }
  0x1a   : > { %v236_v6 = vld [vmem:[%s971_s30 + $0x10] sm:$0xff]  ;;  %v237_v9 = vld [vmem:[%s971_s30 + $0x18] sm:$0xff]  ;;  %v234_v11 = vld [vmem:[%s971_s30] sm:$0xff] }
  0x1b   : > { %v242_v8 = vsub.f32 %v230_v5, %v236_v6  ;;  %v243_v12 = vsub.f32 %v231_v7, %v237_v9  ;;  %v240_v13 = vsub.f32 %v228_v10, %v234_v11  ;;  %v229_v14 = vld [vmem:[%s966_s27 + $0x8] sm:$0xff]  ;;  %v232_v16 = vld [vmem:[%s966_s27 + $0x20] sm:$0xff] }
  0x1c   : > { %v235_v15 = vld [vmem:[%s971_s30 + $0x8] sm:$0xff]  ;;  %v238_v18 = vld [vmem:[%s971_s30 + $0x20] sm:$0xff] }
  0x1d   : > { %648 = vmatprep.mubr.msk.f32.mxu1 %vm246_vm0, %v242_v8  ;;  %v241_v17 = vsub.f32 %v229_v14, %v235_v15  ;;  %v233_v19 = vld [vmem:[%s966_s27 + $0x28] sm:$0xff]  ;;  %645 = vmatprep.mubr.msk.f32.mxu0 %vm246_vm0, %v240_v13  ;;  %v244_v21 = vsub.f32 %v232_v16, %v238_v18 }
  0x1e   : > { %v239_v20 = vld [vmem:[%s971_s30 + $0x28] sm:$0xff]  ;;  %649 = vmatmul.mubr.msk.f32.vlgmr.msra.gmra.mrb[0].mxu1 %vm246_vm0, %v243_v12 }
  0x1f   : > { %v245_v22 = vsub.f32 %v233_v19, %v239_v20  ;;  %646 = vmatmul.mubr.msk.f32.vlgmr.msra.gmra.mrb[0].mxu0 %vm246_vm0, %v241_v17  ;;  %651 = vmatprep.mubr.msk.f32.mxu1 %vm246_vm0, %v244_v21 }
  0x22   : > { %652 = vmatmul.mubr.msk.f32.gmra.mrb[2].mxu1 %vm246_vm0, %v245_v22 }
  0xf1   : > { %v650_v23 = vpop.f32.mrb[0].mxu1  ;;  %571 = sbr.rel (%p626_p12) target bundleno = 498 (0x1f2), region = 78 }
  0xf2   : > { %363 = vst.msk [vmem:[#allocation2 + $0x18] sm:$0xff] %vm246_vm0, %v650_v23  ;;  %v341_v24 = vpop.f32.mrb[1].mxu1  ;;  %v647_v25 = vpop.f32.mrb[0].mxu0 }
  0xf3   : > { %362 = vst.msk [vmem:[#allocation2 + $0x10] sm:$0xff] %vm246_vm0, %v341_v24  ;;  %361 = vst.msk [vmem:[#allocation2 + $0x8] sm:$0xff] %vm246_vm0, %v647_v25  ;;  %v331_v26 = vpop.f32.mrb[1].mxu0 }
  0xf4   : > { %360 = vst.msk [vmem:[#allocation2] sm:$0xff] %vm246_vm0, %v331_v26 }
  0xf5   : > { %v653_v27 = vpop.f32.mrb[2].mxu1 }
  0xf6   : > { %365 = vst.msk [vmem:[#allocation2 + $0x28] sm:$0xff] %vm246_vm0, %v653_v27  ;;  %v351_v28 = vpop.f32.mrb[3].mxu1 }
  0xf7   : > { %364 = vst.msk [vmem:[#allocation2 + $0x20] sm:$0xff] %vm246_vm0, %v351_v28 }
  0xf8 LB: >> { %658 = vmatprep.mubr.msk.f32.mxu0 %vm246_vm0, %v945_v2  ;;  %s619_s8 = sshll.u32 %s850_s7, 4  ;;  %s369_s7 = sadd.s32 1, %s850_s7   ;;  %s850_s7 = sphi %s1003_s7, %s369_s7   ;;  %v846_v32 = vphi %v844_v32, %v845_v32   ;;  %v842_v31 = vphi %v840_v31, %v841_v31  }
  0xf9   : >> { %s375_s10 = scalar_lea.vmem [#allocation2], %s619_s8  ;;  %s459_s11 = scalar_lea.vmem %s966_s27, %s619_s8 }
  0xfa   : >> { %s462_s12 = scalar_lea.vmem %s971_s30, %s619_s8  ;;  %v461_v36 = vld [vmem:[%s459_s11 + $0x8] sm:$0xff]  ;;  %v460_v38 = vld [vmem:[%s459_s11] sm:$0xff]  ;;  %p368_p13 = scmp.ge.s32.totalorder %s369_s7, %s961_s14 }
  0xfb   : >> { %v464_v37 = vld [vmem:[%s462_s12 + $0x8] sm:$0xff]  ;;  %v463_v39 = vld [vmem:[%s462_s12] sm:$0xff] }
  0xfc   : >> { %v466_v40 = vsub.f32 %v461_v36, %v464_v37  ;;  %v465_v41 = vsub.f32 %v460_v38, %v463_v39 }
  0xfe   : >> { %v376_v33 = vld [vmem:[%s375_s10] sm:$0xff]  ;;  %v377_v34 = vld [vmem:[%s375_s10 + $0x8] sm:$0xff] }
  0xff   : >> { %v665_v35 = vpack.c.bf16 %v377_v34, %v376_v33 }
 0x101   : >> { %666 = vmatprep.subr.bf16.mxu0 %v665_v35 }
 0x102   : >> { %668 = vmatpush3.bf16.msra.mxu0 %v665_v35 }
 0x105   : >> { %659 = vmatmul.mubr.msk.f32.vlgmr.msra.gmra.mrb[0].mxu0 %vm246_vm0, %v954_v4 }
 0x1d8   : >> { %v660_v42 = vpop.f32.mrb[0].mxu0 }
 0x1d9   : >> { %v468_v43 = vsub.f32 %v466_v40, %v660_v42  ;;  %v450_v44 = vpop.f32.mrb[1].mxu0 }
 0x1da   : >> { %v467_v45 = vsub.f32 %v465_v41, %v450_v44 }
 0x1db   : >> { %v470_v46 = vmul.f32 %v468_v43, %v468_v43 }
 0x1dc   : >> { %v469_v47 = vmul.f32 %v467_v45, %v467_v45 }
 0x1dd   : >> { %v472_v48 = vadd.f32 1.0000001e-06, %v470_v46 }
 0x1de   : >> { %v471_v49 = vadd.f32 1.0000001e-06, %v469_v47 }
 0x1df   : >> { %752 = vrsqrt.f32 %v472_v48  ;;  %vm482_vm1 = vcmp.eq.f32.partialorder %v472_v48, inf  ;;  %v485_v53 = vand.u32 2147483648, %v472_v48  ;;  %vm484_vm2 = vcmp.eq.f32.partialorder %v472_v48, 0.0 }
 0x1e0   : >> { %754 = vrsqrt.f32 %v471_v49  ;;  %vm475_vm3 = vcmp.eq.f32.partialorder %v471_v49, inf  ;;  %v478_v56 = vand.u32 2147483648, %v471_v49  ;;  %vm477_vm4 = vcmp.eq.f32.partialorder %v471_v49, 0.0 }
 0x1e9   : >> { %v753_v50 = vpop.eup %752 }
 0x1ea   : >> { %v755_v51 = vpop.eup %754  ;;  %v481_v52 = vmul.f32 %v753_v50, %v472_v48 }
 0x1eb   : >> { %v474_v54 = vmul.f32 %v755_v51, %v471_v49  ;;  %371 = sbr.rel (!%p368_p13) target bundleno = 248 (0xf8), region = 84 }
 0x1ec   : >> { %v483_v55 = vsel %vm482_vm1, %v472_v48, %v481_v52 }
 0x1ed   : >> { %v486_v57 = vsel %vm484_vm2, %v485_v53, %v483_v55  ;;  %v476_v58 = vsel %vm475_vm3, %v471_v49, %v474_v54 }
 0x1ee   : >> { %v488_v59 = vadd.f32 %v842_v31, %v486_v57   ;;  %v479_v60 = vsel %vm477_vm4, %v478_v56, %v476_v58 }
 0x1ef   : >> { %v487_v61 = vadd.f32 %v846_v32, %v479_v60  }
 0x1f0   : >> { %v841_v31 = vmov %v488_v59   ;;  %v1086_v29 = vmov (%p368_p13), %v488_v59 }
 0x1f1   : >> { %v845_v32 = vmov %v487_v61   ;;  %v1087_v30 = vmov (%p368_p13), %v487_v61 }
 0x1f2 PF: > { %v489_v62 = vsel %vm246_vm0, %v858_v30, 0.0  ;;  %v490_v63 = vsel %vm246_vm0, %v854_v29, 0.0  ;;  %s623_s13 = sshll.u32 %s907_s19, 7  ;;  %s517_s14 = sshll.u32 %s207_s6, 4  ;;  %v858_v30 = vphi %v1001_v30, %v1087_v30   ;;  %v854_v29 = vphi %v999_v29, %v1086_v29   ;;  %s1035_s14 = int_to_ptr.vmem [resolvable:$true] %s517_s14 }
 0x1f3   : > { %v491_v0 = vadd.f32 %v490_v63, %v489_v62  ;;  %s1033_s23 = scalar_lea.hbm %s1083_s4, %s623_s13  ;;  %s504_s28 = scalar_lea.sflag [#allocation4], %s205_s5 }
 0x1f4   : > { %s756_s29 = scalar_lea.vmem %s1035_s14, 128  ;;  %s860_s19 = smov [#allocation3]  }
 0x1f5   : > { %492 = vadd.xlane.f32.xlu0 %v491_v0  ;;  %p757_p0 = scmp.ne.s32.totalorder %s1035_s14, %s756_s29  ;;  %s760_s30 = sshll.u32 %s860_s19, 4  ;;  %s761_s30 = int_to_ptr.vmem [resolvable:$false] %s760_s30 }
 0x1f6   : > { %s762_s7 = scalar_lea.vmem %s761_s30, 256  ;;  %p763_p3 = scmp.lt.s32.totalorder %s1035_s14, %s761_s30 }
 0x1f7   : > { %p758_p1 = pnand %p757_p0, %p924_p5  ;;  %p764_p4 = scmp.lt.s32.totalorder %s762_s7, %s756_s29 }
 0x1f9   : > { %p759_p2 = pneg %p758_p1  ;;  %p765_p7 = por %p764_p4, %p763_p3 }
 0x1fb   : > { %p766_p8 = pnand %p765_p7, %p759_p2 }
 0x282   : > { %v493_v1 = vpop.xlane.xlu0 %492 }
 0x283   : > { %v494_v2 = vrot.slane %v493_v1, 4 }
 0x285   : > { %v495_v3 = vadd.f32 %v494_v2, %v493_v1 }
 0x287   : > { %v496_v4 = vrot.slane %v495_v3, 2 }
 0x289   : > { %v497_v5 = vadd.f32 %v496_v4, %v495_v3 }
 0x28b   : > { %v498_v6 = vrot.slane %v497_v5, 1 }
 0x28d   : > { %v499_v7 = vadd.f32 %v498_v6, %v497_v5 }
 0x28f   : > { %671 = vpush %v499_v7 }
 0x2c0   : > { %s672_s27 = spop %671 }
 0x2c1   : > { %v501_v8 = vstv %s672_s27 }
 0x2c2   : > { %502 = vst [vmem:[%s207_s6] sm:$0xff] %v501_v8 }
 0x2c3   : > { %769 = shalt.err (!%p766_p8)
}
 0x2c4   : > { %s770_s5 = scalar_lea.hbm %s1033_s23, 128  ;;  %s774_s8 = scalar_lea.hbm %s1083_s4, 256 }
 0x2c5   : > { %p771_p9 = scmp.ne.s32.totalorder %s1033_s23, %s770_s5  ;;  %p775_p12 = scmp.lt.u32.totalorder %s1033_s23, %s1083_s4 }
 0x2c6   : > { %p776_p13 = scmp.lt.u32.totalorder %s774_s8, %s770_s5  ;;  %p778_p1 = scmp.lt.u32.totalorder %s770_s5, %s1033_s23 }
 0x2c7   : > { %p772_p10 = pnand %p771_p9, %p924_p5 }
 0x2c8   : > { %p777_p0 = por %p776_p13, %p775_p12 }
 0x2c9   : > { %p773_p11 = pneg %p772_p10 }
 0x2ca   : > { %p779_p2 = por %p778_p1, %p777_p0 }
 0x2cc   : > { %p780_p3 = pnand %p779_p2, %p773_p11 }
 0x2ce   : > { %783 = shalt.err (!%p780_p3)
}
 0x2cf   : > { %673 = dma.vmem_to_hbm [thread:$0]  (%p924_p5), %s1035_s14, 128, %s1033_s23, %s504_s28  }
 0x2d0 PF: > { %p679_p4 = scmp.ge.s32.totalorder %s838_s18, 2  ;;  %s529_s12 = sand.u32 1, %s826_s15  }
 0x2d1   : > { %s530_s13 = scalar_lea.sflag [#allocation4], %s529_s12 }
 0x2d2   : > { %p676_p7 = pnand %p679_p4, %p928_p6 }
 0x2d4   : > { %821 = dma.done.wait (!%p676_p7), %s530_s13, 128  }
 0x2d5   : > { %823 = vsyncadd (!%p676_p7), %s530_s13, 4294967168  ;;  %p14_p8 = scmp.ge.s32.totalorder %s911_s21, 4   ;;  %s1088_s15 = smov %s830_s16 }
 0x2d6   : > { %s1089_s16 = smov %s834_s17  ;;  %s1090_s17 = smov %s922_s24 }
 0x2d7   : > { %s1091_s18 = smov %s911_s21  ;;  %16 = sbr.rel (!%p14_p8) target bundleno = 3 (0x3), region = 95 }
 0x2de   :  { %535 = vsyncpa [#allocation4], 1 }
 0x2df   :  { %537 = vsyncpa [#allocation4 + $0x1], 1 }

</bundles_post_ra>
